<compile_context>
chip_gen: v7x
topology: tpu7x:2x2x1
jax: 0.10.0
libtpu: 0.0.40
codegen_flags: <defaults>
</compile_context>

<pallas_src>
import jax
import jax.numpy as jnp
from jax.experimental import pallas as pl
from jax.experimental.pallas import tpu as pltpu

TAU = 10
HIDDEN = 64
OUT = 1


def mlp_kernel(xT_ref, w1_ref, b1_ref, w2_ref, b2_ref, oT_ref):
    # fc1 on the MXU: (HIDDEN, TAU) @ (TAU, TILE_B) -> (HIDDEN, TILE_B), f32 acc.
    h = jnp.dot(w1_ref[...], xT_ref[...], preferred_element_type=jnp.float32)
    # bias (HIDDEN, 1) broadcasts over lanes; ReLU on the VPU.
    h = jnp.maximum(h + b1_ref[...], 0.0)
    # fc2 (64 -> 1) without the MXU: VPU mul by the (HIDDEN, 1) weight column,
    # then XLU reduce over the hidden (sublane) axis -> (1, TILE_B).
    y = jnp.sum(h * w2_ref[...], axis=0, keepdims=True)
    oT_ref[...] = (y + b2_ref[...]).astype(oT_ref.dtype)


def net_forward(x, w1, b1, w2, b2, *, tile_b=512):
    """Forward pass of Net.

    x  : (B, TAU)       f32
    w1 : (HIDDEN, TAU)  f32   (PyTorch nn.Linear layout)
    b1 : (HIDDEN,)      f32
    w2 : (OUT, HIDDEN)  f32
    b2 : (OUT,)         f32
    returns (B, OUT) f32
    """
    B = x.shape[0]
    # Lane-dense batch tiles: tile_b must be a multiple of 128, and no larger
    # than the (padded) batch.  Tiny tiles fit easily in VMEM on all chips
    # (v7x's 64 MiB included): double-buffered x tile + hidden + out is < 2 MiB
    # even at tile_b = 2048.
    tile_b = max(128, min(int(tile_b), pl.cdiv(B, 128) * 128))
    Bp = pl.cdiv(B, tile_b) * tile_b

    # Layout plumbing outside the kernel: zero-pad the batch and put it last.
    x_pad = jnp.zeros((Bp, TAU), x.dtype).at[:B].set(x)
    xT = x_pad.T                         # (TAU, Bp)
    b1_col = b1.reshape(HIDDEN, 1)       # broadcast over lanes inside kernel
    w2_col = w2.T                        # (HIDDEN, OUT) weight column
    b2_2d = b2.reshape(OUT, OUT)         # (1, 1)

    grid = (Bp // tile_b,)

    cost = pl.CostEstimate(
        flops=2 * Bp * (TAU * HIDDEN + HIDDEN),
        transcendentals=0,
        bytes_accessed=4 * (Bp * TAU + Bp * OUT + HIDDEN * (TAU + 2) + OUT),
    )

    outT = pl.pallas_call(
        mlp_kernel,
        out_shape=jax.ShapeDtypeStruct((OUT, Bp), jnp.float32),
        grid=grid,
        in_specs=[
            pl.BlockSpec((TAU, tile_b), lambda i: (0, i)),      # x tile (batch on lanes)
            pl.BlockSpec((HIDDEN, TAU), lambda i: (0, 0)),      # w1 (VMEM-resident)
            pl.BlockSpec((HIDDEN, 1), lambda i: (0, 0)),        # b1 column
            pl.BlockSpec((HIDDEN, OUT), lambda i: (0, 0)),      # w2 column
            pl.BlockSpec((OUT, OUT), lambda i: (0, 0)),         # b2 scalar
        ],
        out_specs=pl.BlockSpec((OUT, tile_b), lambda i: (0, i)),
        compiler_params=pltpu.CompilerParams(
            dimension_semantics=("parallel",),   # shard batch tiles across TCs on v7x
        ),
        cost_estimate=cost,
    )(xT, w1, b1_col, w2_col, b2_2d)

    # Drop padded columns and return (B, OUT), matching the PyTorch module.
    return outT[:, :B].T


def init_params(key):
    """Deterministic init mimicking PyTorch's default Linear init
    (uniform(-1/sqrt(fan_in), 1/sqrt(fan_in))), in PyTorch weight layout."""
    k1, k2, k3, k4 = jax.random.split(key, 4)
    bound1 = 1.0 / jnp.sqrt(TAU)
    bound2 = 1.0 / jnp.sqrt(HIDDEN)
    w1 = jax.random.uniform(k1, (HIDDEN, TAU), jnp.float32, -bound1, bound1)
    b1 = jax.random.uniform(k2, (HIDDEN,), jnp.float32, -bound1, bound1)
    w2 = jax.random.uniform(k3, (OUT, HIDDEN), jnp.float32, -bound2, bound2)
    b2 = jax.random.uniform(k4, (OUT,), jnp.float32, -bound2, bound2)
    return w1, b1, w2, b2


if __name__ == "__main__":
    key = jax.random.PRNGKey(0)
    kx, kp = jax.random.split(key)

    # Small batch of sliding-window features (like windows of the noisy sine
    # sequence in the original script).  300 is deliberately not a multiple of
    # 128 to exercise the padding path, and with tile_b=128 it runs a 3-step
    # batch-tiled grid.
    batch = 300
    x = jax.random.normal(kx, (batch, TAU), dtype=jnp.float32)

    w1, b1, w2, b2 = init_params(kp)

    out = net_forward(x, w1, b1, w2, b2, tile_b=128)
    out = jax.block_until_ready(out)

    # Reference check in plain JAX (PyTorch layout: y = relu(x W1^T + b1) W2^T + b2)
    ref = jnp.maximum(x @ w1.T + b1, 0.0) @ w2.T + b2
    assert out.shape == (batch, OUT)
    assert jnp.allclose(out, ref, atol=1e-4, rtol=1e-5)

    print("KERNEL_OK")
</pallas_src>

<mosaic_0001>
module attributes {stable_mosaic.version = 11 : i64} {
  func.func @mlp_kernel(%arg0: i32, %arg1: memref<10x128xf32, #tpu.memory_space<vmem>>, %arg2: memref<64x10xf32, #tpu.memory_space<vmem>>, %arg3: memref<64x1xf32, #tpu.memory_space<vmem>>, %arg4: memref<64x1xf32, #tpu.memory_space<vmem>>, %arg5: memref<1x1xf32, #tpu.memory_space<vmem>>, %arg6: memref<1x128xf32, #tpu.memory_space<vmem>>) attributes {dimension_semantics = [#tpu.dimension_semantics<parallel>], iteration_bounds = array<i64: 3>, scalar_prefetch = 0 : i64, scratch_operands = 0 : i64, tpu.core_type = #tpu.core_type<tc>, window_params = [{transform_indices = @transform_0, window_bounds = array<i64: 10, 128>}, {pipeline_mode = #tpu.pipeline_mode<synchronous>, transform_indices = @transform_1, window_bounds = array<i64: 64, 10>}, {pipeline_mode = #tpu.pipeline_mode<synchronous>, transform_indices = @transform_2, window_bounds = array<i64: 64, 1>}, {pipeline_mode = #tpu.pipeline_mode<synchronous>, transform_indices = @transform_3, window_bounds = array<i64: 64, 1>}, {pipeline_mode = #tpu.pipeline_mode<synchronous>, transform_indices = @transform_4, window_bounds = array<i64: 1, 1>}, {transform_indices = @transform_5, window_bounds = array<i64: 1, 128>}]} {
    %c0 = arith.constant 0 : index
    %c0_0 = arith.constant 0 : index
    %0 = vector.load %arg2[%c0, %c0_0] : memref<64x10xf32, #tpu.memory_space<vmem>>, vector<64x10xf32>
    %c0_1 = arith.constant 0 : index
    %c0_2 = arith.constant 0 : index
    %1 = vector.load %arg1[%c0_1, %c0_2] : memref<10x128xf32, #tpu.memory_space<vmem>>, vector<10x128xf32>
    %cst = arith.constant dense<0.000000e+00> : vector<64x128xf32>
    %2 = tpu.matmul %0, %1, %cst {dimension_numbers = #tpu.dot_dimension_numbers<[1], [0], [0], [1], [0, 0, 1, 1], [], []>} : vector<64x10xf32>, vector<10x128xf32>, vector<64x128xf32> -> vector<64x128xf32>
    %c0_3 = arith.constant 0 : index
    %c0_4 = arith.constant 0 : index
    %3 = vector.load %arg3[%c0_3, %c0_4] : memref<64x1xf32, #tpu.memory_space<vmem>>, vector<64x1xf32>
    %4 = vector.broadcast %3 : vector<64x1xf32> to vector<64x128xf32>
    %5 = arith.addf %2, %4 : vector<64x128xf32>
    %cst_5 = arith.constant 0.000000e+00 : f32
    %6 = vector.broadcast %cst_5 : f32 to vector<64x128xf32>
    %7 = arith.maximumf %5, %6 : vector<64x128xf32>
    %c0_6 = arith.constant 0 : index
    %c0_7 = arith.constant 0 : index
    %8 = vector.load %arg4[%c0_6, %c0_7] : memref<64x1xf32, #tpu.memory_space<vmem>>, vector<64x1xf32>
    %9 = vector.broadcast %8 : vector<64x1xf32> to vector<64x128xf32>
    %10 = arith.mulf %7, %9 : vector<64x128xf32>
    %cst_8 = arith.constant dense<0.000000e+00> : vector<128xf32>
    %11 = vector.multi_reduction <add>, %10, %cst_8 [0] : vector<64x128xf32> to vector<128xf32>
    %12 = vector.shape_cast %11 : vector<128xf32> to vector<1x128xf32>
    %c0_9 = arith.constant 0 : index
    %c0_10 = arith.constant 0 : index
    %13 = vector.load %arg5[%c0_9, %c0_10] : memref<1x1xf32, #tpu.memory_space<vmem>>, vector<1x1xf32>
    %14 = vector.broadcast %13 : vector<1x1xf32> to vector<1x128xf32>
    %15 = arith.addf %12, %14 : vector<1x128xf32>
    %c0_11 = arith.constant 0 : index
    %c0_12 = arith.constant 0 : index
    %16 = vector.load %arg6[%c0_11, %c0_12] : memref<1x128xf32, #tpu.memory_space<vmem>>, vector<1x128xf32>
    tpu.vector_store %arg6[%c0_11, %c0_12], %15 {strides = array<i32>} : memref<1x128xf32, #tpu.memory_space<vmem>>, vector<1x128xf32>,
    return
  }
  func.func @transform_0(%arg0: i32) -> (i32, i32) {
    %c0_i32 = arith.constant 0 : i32
    %c0_i32_0 = arith.constant 0 : i32
    return %c0_i32, %arg0 : i32, i32
  }
  func.func @transform_1(%arg0: i32) -> (i32, i32) {
    %c0_i32 = arith.constant 0 : i32
    %c0_i32_0 = arith.constant 0 : i32
    %c0_i32_1 = arith.constant 0 : i32
    return %c0_i32, %c0_i32_0 : i32, i32
  }
  func.func @transform_2(%arg0: i32) -> (i32, i32) {
    %c0_i32 = arith.constant 0 : i32
    %c0_i32_0 = arith.constant 0 : i32
    %c0_i32_1 = arith.constant 0 : i32
    return %c0_i32, %c0_i32_0 : i32, i32
  }
  func.func @transform_3(%arg0: i32) -> (i32, i32) {
    %c0_i32 = arith.constant 0 : i32
    %c0_i32_0 = arith.constant 0 : i32
    %c0_i32_1 = arith.constant 0 : i32
    return %c0_i32, %c0_i32_0 : i32, i32
  }
  func.func @transform_4(%arg0: i32) -> (i32, i32) {
    %c0_i32 = arith.constant 0 : i32
    %c0_i32_0 = arith.constant 0 : i32
    %c0_i32_1 = arith.constant 0 : i32
    return %c0_i32, %c0_i32_0 : i32, i32
  }
  func.func @transform_5(%arg0: i32) -> (i32, i32) {
    %c0_i32 = arith.constant 0 : i32
    %c0_i32_0 = arith.constant 0 : i32
    return %c0_i32, %arg0 : i32, i32
  }
}

</mosaic_0001>

<bundles_post_ra>
// kernel: tpu_custom_call.1
= control target key start
LH: loop header
LB: loop body
LE: loop exit
PB: predicated region body
PF: predicated region fallthrough
CT: control target
= control target key end

     0   :  { %s1000_s0 = inlined_call_operand.vmem [shape: f32[10,384], index: 0, kind: input, shape index: {}]   ;;  %s1001_s1 = inlined_call_operand.vmem [shape: f32[64,10], index: 1, kind: input, shape index: {}]   ;;  %s1002_s2 = inlined_call_operand.vmem [shape: f32[64,1], index: 2, kind: input, shape index: {}]   ;;  %s1003_s3 = inlined_call_operand.vmem [shape: f32[64,1], index: 3, kind: input, shape index: {}]   ;;  %s1004_s4 = inlined_call_operand.<no memory space> [shape: f32[1,1], index: 4, kind: input, shape index: {}]   ;;  %s1005_s5 = inlined_call_operand.hbm [shape: f32[1,384], index: 5, kind: output, shape index: {}]  }
   0x1   :  { %v10_v0 = vstv %s1004_s4 }
   0x2   :  { %11 = vst [vmem:[#allocation2] sm:$0x1] %v10_v0 }
   0x3   :  { %12 = vsyncpa [#allocation5], 0 }
   0x4   :  { %14 = vsyncpa [#allocation5 + $0x1], 0  ;;  %s813_s20 = smov 0   ;;  %s815_s21 = smov 0  }
   0x5   :  { %s817_s22 = smov 0   ;;  %s819_s23 = smov 0  }
   0x6 LB: > { %s616_s4 = sadd.s32 4294967295, %s775_s23   ;;  %s617_s24 = sadd.s32 4294967294, %s775_s23   ;;  %s775_s23 = sphi %s819_s23, %s1011_s23   ;;  %s771_s22 = sphi %s817_s22, %s1010_s22   ;;  %s767_s21 = sphi %s815_s21, %s1009_s21   ;;  %s763_s20 = sphi %s813_s20, %s1008_s20  }
   0x7   : > { %s836_s25 = sadd.s32 1, %s775_s23   ;;  %s27_s26 = sadd.s32 1, %s771_s22 }
   0x8   : > { %s24_s27 = ssub.s32 %s775_s23, %s836_s25  ;;  %p34_p0 = scmp.ne.s32.totalorder %s771_s22, %s767_s21 }
   0x9   : > { %p25_p1 = scmp.eq.s32.totalorder %s24_s27, 0  ;;  %p35_p2 = scmp.eq.s32.totalorder %s775_s23, 0 }
   0xa   : > { %p148_p3 = scmp.eq.s32.totalorder %s616_s4, 2  ;;  %p153_p4 = scmp.ne.s32.totalorder %s767_s21, %s763_s20 }
   0xb   : > { %s849_s28 = scalar_select %p25_p1, %s771_s22, %s27_s26  }
   0xc   : > { %p36_p5 = por %p35_p2, %p34_p0  ;;  %p851_p6 = por %p148_p3, %p34_p0 }
   0xd   : > { %p154_p7 = scmp.eq.s32.totalorder %s617_s24, 2  ;;  %p619_p9 = scmp.ge.s32.totalorder %s775_s23, 3 }
   0xf   : > { %p855_p8 = por %p154_p7, %p153_p4  ;;  %182 = sbr.rel (%p619_p9) target bundleno = 29 (0x1d), region = 32 }
  0x16   : > { %185 = sbr.rel (!%p36_p5) target bundleno = 29 (0x1d), region = 36  ;;  %s187_s6 = sand.u32 (%p36_p5), 1, %s771_s22  }
  0x17   : > { %s621_s7 = sshll.u32 (%p36_p5), %s775_s23, 3  ;;  %s620_s8 = sshll.u32 (%p36_p5), %s187_s6, 4 }
  0x18   : > { %s191_s11 = scalar_lea.vmem (%p36_p5), %s1000_s0, %s621_s7  ;;  %s189_s12 = scalar_lea.vmem (%p36_p5), [#allocation3], %s620_s8 }
  0x19   : > { %v221_v1 = vld [vmem:[%s191_s11] sm:$0xff] (%p36_p5)  ;;  %v223_v2 = vld [vmem:[%s191_s11 + $0x18] sm:$0xff] (%p36_p5) }
  0x1a   : > { %222 = vst [vmem:[%s189_s12] sm:$0xff] (%p36_p5), %v221_v1  ;;  %224 = vst [vmem:[%s189_s12 + $0x8] sm:$0xff] (%p36_p5), %v223_v2 }
  0x1d PF: > { %p622_p10 = scmp.ge.s32.totalorder %s775_s23, 1  ;;  %p229_p11 = scmp.lt.s32.totalorder %s775_s23, 4 }
  0x1f   : > { %p230_p12 = pnand %p622_p10, %p229_p11 }
  0x20   : > { %s868_s13 = sand.u32 (!%p230_p12), 1, %s767_s21   ;;  %vm345_vm0 = vcmask (!%p230_p12), 1041408   ;;  %v262_v3 = vld [vmem:[%s1001_s1] sm:$0xff] (!%p230_p12)  ;;  %vm320_vm1 = vcmask (!%p230_p12), 80896   ;;  %v777_v5 = vmov (!%p230_p12), 0   ;;  %vm778_vm2 = vmmov (!%p230_p12), 1  }
  0x21   : > { %233 = sbr.rel (%p230_p12) target bundleno = 305 (0x131), region = 74  ;;  %v266_v4 = vld [vmem:[%s1001_s1 + $0x20] sm:$0xff] (!%p230_p12)  ;;  %s623_s18 = sshll.u32 (!%p230_p12), %s868_s13, 4  ;;  %650 = vmatprep.mubr.msk.f32.mxu0 (!%p230_p12), %vm320_vm1, %v262_v3  ;;  %711 = vset.pattern.permute.xlu0 (!%p230_p12), %v777_v5  ;;  %vm663_vm3 = vmpackc.low (!%p230_p12), %vm345_vm0, %vm778_vm2  ;;  %v274_v10 = vld [vmem:[%s1002_s2 + $0x10] sm:$0xff] (!%p230_p12) }
  0x22   : > { %656 = vmatprep.mubr.msk.f32.mxu1 (!%p230_p12), %vm320_vm1, %v266_v4  ;;  %712 = vset.pattern.permute.xlu1 (!%p230_p12), %v777_v5  ;;  %s238_s19 = scalar_lea.vmem (!%p230_p12), [#allocation3], %s623_s18  ;;  %v272_v9 = vld [vmem:[%s1002_s2] sm:$0xff] (!%p230_p12)  ;;  %v273_v11 = vld [vmem:[%s1002_s2 + $0x8] sm:$0xff] (!%p230_p12)  ;;  %v275_v12 = vld [vmem:[%s1002_s2 + $0x18] sm:$0xff] (!%p230_p12)  ;;  %s633_s16 = sshll.u32 (!%p230_p12), %s616_s4, 4 }
  0x23   : > { %v270_v6 = vld [vmem:[%s238_s19] sm:$0xff] (!%p230_p12)  ;;  %v271_v7 = vld [vmem:[%s238_s19 + $0x8] sm:$0x3] (!%p230_p12)  ;;  %282 = vperm.xlu0 (!%p230_p12), %711, %v272_v9   ;;  %292 = vperm.xlu1 (!%p230_p12), %712, %v274_v10   ;;  %v531_v31 = vld [vmem:[#allocation2] sm:$0x1] (!%p230_p12)  ;;  %s261_s17 = scalar_lea.vmem (!%p230_p12), [#allocation4], %s868_s13  ;;  %s957_s26 = scalar_lea.hbm (!%p230_p12), %s1005_s5, %s633_s16 }
  0x24   : > { %v662_v8 = vpack.c.bf16 (!%p230_p12), %v271_v7, %v270_v6  ;;  %v263_v13 = vld [vmem:[%s1001_s1 + $0x8] sm:$0xff] (!%p230_p12)  ;;  %v264_v15 = vld [vmem:[%s1001_s1 + $0x10] sm:$0xff] (!%p230_p12)  ;;  %v462_v17 = vld [vmem:[%s1003_s3] sm:$0xff] (!%p230_p12)  ;;  %s556_s18 = sshll.u32 (!%p230_p12), %s261_s17, 4  ;;  %s544_s27 = scalar_lea.sflag (!%p230_p12), [#allocation5], %s868_s13  ;;  %s959_s18 = int_to_ptr.vmem [resolvable:$true] %s556_s18 }
  0x25   : > { %v267_v14 = vld [vmem:[%s1001_s1 + $0x28] sm:$0xff] (!%p230_p12)  ;;  %v268_v16 = vld [vmem:[%s1001_s1 + $0x30] sm:$0xff] (!%p230_p12)  ;;  %v265_v19 = vld [vmem:[%s1001_s1 + $0x18] sm:$0xff] (!%p230_p12)  ;;  %s713_s6 = scalar_lea.vmem (!%p230_p12), %s959_s18, 16  ;;  %s779_s4 = smov (!%p230_p12), [#allocation4]  }
  0x26   : > { %664 = vmatprep.subr.msk.bf16.mxu0 (!%p230_p12), %vm663_vm3, %v662_v8  ;;  %668 = vmatprep.subr.msk.bf16.mxu1 (!%p230_p12), %vm663_vm3, %v662_v8  ;;  %v463_v18 = vld [vmem:[%s1003_s3 + $0x8] sm:$0xff] (!%p230_p12)  ;;  %v269_v20 = vld [vmem:[%s1001_s1 + $0x38] sm:$0xff] (!%p230_p12)  ;;  %v276_v21 = vld [vmem:[%s1002_s2 + $0x20] sm:$0xff] (!%p230_p12)  ;;  %p714_p13 = scmp.ne.s32.totalorder (!%p230_p12), %s959_s18, %s713_s6  ;;  %s717_s7 = sshll.u32 (!%p230_p12), %s779_s4, 4  ;;  %s718_s7 = int_to_ptr.vmem [resolvable:$false] %s717_s7 }
  0x27   : > { %667 = vmatpush3.bf16.msk.msra.mxu0 (!%p230_p12), %vm663_vm3, %v662_v8  ;;  %669 = vmatpush3.bf16.msk.msra.mxu1 (!%p230_p12), %vm663_vm3, %v662_v8  ;;  %v464_v22 = vld [vmem:[%s1003_s3 + $0x10] sm:$0xff] (!%p230_p12)  ;;  %v277_v23 = vld [vmem:[%s1002_s2 + $0x28] sm:$0xff] (!%p230_p12)  ;;  %v465_v24 = vld [vmem:[%s1003_s3 + $0x18] sm:$0xff] (!%p230_p12)  ;;  %s719_s8 = scalar_lea.vmem (!%p230_p12), %s718_s7, 32  ;;  %p720_p2 = scmp.lt.s32.totalorder (!%p230_p12), %s959_s18, %s718_s7 }
  0x28   : > { %287 = vperm.xlu0 %711, %v273_v11   ;;  %297 = vperm.xlu1 %712, %v275_v12   ;;  %v278_v25 = vld [vmem:[%s1002_s2 + $0x30] sm:$0xff]  ;;  %v466_v26 = vld [vmem:[%s1003_s3 + $0x20] sm:$0xff]  ;;  %v279_v27 = vld [vmem:[%s1002_s2 + $0x38] sm:$0xff]  ;;  %p715_p0 = pnand %p714_p13, %p851_p6  ;;  %p721_p3 = scmp.lt.s32.totalorder %s719_s8, %s713_s6 }
  0x29   : > { %v467_v28 = vld [vmem:[%s1003_s3 + $0x28] sm:$0xff]  ;;  %v468_v29 = vld [vmem:[%s1003_s3 + $0x30] sm:$0xff]  ;;  %v469_v30 = vld [vmem:[%s1003_s3 + $0x38] sm:$0xff] }
  0x2a   : > { %651 = vmatmul.mubr.msk.f32.vlgmr.msra.gmra.mrb[0].mxu0 %vm320_vm1, %v263_v13  ;;  %657 = vmatmul.mubr.msk.f32.vlgmr.msra.gmra.mrb[0].mxu1 %vm320_vm1, %v267_v14  ;;  %p716_p1 = pneg %p715_p0  ;;  %p722_p4 = por %p721_p3, %p720_p2 }
  0x2b   : > { %653 = vmatprep.mubr.msk.f32.mxu0 %vm320_vm1, %v264_v15  ;;  %659 = vmatprep.mubr.msk.f32.mxu1 %vm320_vm1, %v268_v16 }
  0x2c   : > { %472 = vperm.xlu0 %711, %v462_v17   ;;  %477 = vperm.xlu1 %712, %v463_v18   ;;  %p723_p5 = pnand %p722_p4, %p716_p1 }
  0x2e   : > { %654 = vmatmul.mubr.msk.f32.gmra.mrb[2].mxu0 %vm320_vm1, %v265_v19  ;;  %660 = vmatmul.mubr.msk.f32.gmra.mrb[2].mxu1 %vm320_vm1, %v269_v20 }
  0x30   : > { %302 = vperm.xlu0 %711, %v276_v21   ;;  %482 = vperm.xlu1 %712, %v464_v22   ;;  %v537_v22 = vlaneseq }
  0x34   : > { %307 = vperm.xlu0 %711, %v277_v23   ;;  %487 = vperm.xlu1 %712, %v465_v24  }
  0x38   : > { %312 = vperm.xlu0 %711, %v278_v25   ;;  %492 = vperm.xlu1 %712, %v466_v26   ;;  %v538_v25 = vshrl.u32 %v537_v22, 7 }
  0x3c   : > { %317 = vperm.xlu0 %711, %v279_v27   ;;  %497 = vperm.xlu1 %712, %v467_v28   ;;  %v539_v28 = vsub.s32 0, %v538_v25 }
  0x40   : > { %502 = vperm.xlu0 %711, %v468_v29   ;;  %507 = vperm.xlu1 %712, %v469_v30  }
  0x44   : > { %534 = vperm.xlu0 %711, %v531_v31  }
  0xa2   : > { %v283_v32 = vpop.permute.xlu0 %282  ;;  %v293_v33 = vpop.permute.xlu1 %292 }
  0xa7   : > { %v288_v34 = vpop.permute.xlu0 %287  ;;  %v298_v35 = vpop.permute.xlu1 %297 }
  0xab   : > { %v473_v36 = vpop.permute.xlu0 %472  ;;  %v478_v37 = vpop.permute.xlu1 %477 }
  0xaf   : > { %v303_v38 = vpop.permute.xlu0 %302  ;;  %v483_v39 = vpop.permute.xlu1 %482 }
  0xb3   : > { %v308_v40 = vpop.permute.xlu0 %307  ;;  %v488_v41 = vpop.permute.xlu1 %487 }
  0xb7   : > { %v313_v48 = vpop.permute.xlu0 %312  ;;  %v493_v60 = vpop.permute.xlu1 %492 }
  0xbb   : > { %v318_v4 = vpop.permute.xlu0 %317  ;;  %v498_v9 = vpop.permute.xlu1 %497 }
  0xbf   : > { %v503_v16 = vpop.permute.xlu0 %502  ;;  %v508_v19 = vpop.permute.xlu1 %507 }
  0xc3   : > { %v535_v30 = vpop.permute.xlu0 %534 }
  0xfd   : > { %v652_v42 = vpop.f32.mrb[0].mxu0  ;;  %v658_v43 = vpop.f32.mrb[0].mxu1 }
  0xfe   : > { %v421_v44 = vadd.f32 %v652_v42, %v288_v34  ;;  %v415_v45 = vpop.f32.mrb[1].mxu0  ;;  %v435_v46 = vpop.f32.mrb[1].mxu1  ;;  %v441_v61 = vadd.f32 %v658_v43, %v308_v40 }
  0xff   : > { %v416_v47 = vadd.f32 %v415_v45, %v283_v32  ;;  %v436_v58 = vadd.f32 %v435_v46, %v303_v38  ;;  %v540_v32 = vrot.slane %v535_v30, %v539_v28 }
 0x100   : > { %v455_v49 = vmax.f32 %v421_v44, 0.0  ;;  %v459_v5 = vmax.f32 %v441_v61, 0.0 }
 0x101   : > { %v454_v50 = vmax.f32 %v416_v47, 0.0  ;;  %v655_v51 = vpop.f32.mrb[2].mxu0  ;;  %v661_v52 = vpop.f32.mrb[2].mxu1  ;;  %v458_v1 = vmax.f32 %v436_v58, 0.0 }
 0x102   : > { %v511_v53 = vmul.f32 %v478_v37, %v455_v49  ;;  %v431_v54 = vadd.f32 %v655_v51, %v298_v35  ;;  %v425_v55 = vpop.f32.mrb[3].mxu0  ;;  %v445_v56 = vpop.f32.mrb[3].mxu1  ;;  %v451_v7 = vadd.f32 %v661_v52, %v318_v4  ;;  %v515_v13 = vmul.f32 %v498_v9, %v459_v5 }
 0x103   : > { %v510_v57 = vmul.f32 %v473_v36, %v454_v50  ;;  %v426_v59 = vadd.f32 %v425_v55, %v293_v33  ;;  %v446_v3 = vadd.f32 %v445_v56, %v313_v48  ;;  %v514_v10 = vmul.f32 %v493_v60, %v458_v1 }
 0x104   : > { %v457_v63 = vmax.f32 %v431_v54, 0.0  ;;  %v461_v14 = vmax.f32 %v451_v7, 0.0 }
 0x105   : > { %v518_v62 = vadd.f32 %v511_v53, %v510_v57  ;;  %v456_v0 = vmax.f32 %v426_v59, 0.0  ;;  %v460_v12 = vmax.f32 %v446_v3, 0.0 }
 0x106   : > { %v513_v6 = vmul.f32 %v488_v41, %v457_v63  ;;  %v517_v20 = vmul.f32 %v508_v19, %v461_v14 }
 0x107   : > { %v512_v2 = vmul.f32 %v483_v39, %v456_v0  ;;  %v516_v17 = vmul.f32 %v503_v16, %v460_v12 }
 0x109   : > { %v519_v8 = vadd.f32 %v518_v62, %v512_v2 }
 0x10b   : > { %v520_v11 = vadd.f32 %v519_v8, %v513_v6 }
 0x10d   : > { %v521_v15 = vadd.f32 %v520_v11, %v514_v10 }
 0x10f   : > { %v522_v18 = vadd.f32 %v521_v15, %v515_v13 }
 0x111   : > { %v523_v21 = vadd.f32 %v522_v18, %v516_v17 }
 0x113   : > { %v524_v23 = vadd.f32 %v523_v21, %v517_v20 }
 0x115   : > { %v525_v24 = vrot.slane %v524_v23, 4 }
 0x117   : > { %v526_v26 = vadd.f32 %v525_v24, %v524_v23 }
 0x119   : > { %v527_v27 = vrot.slane %v526_v26, 2 }
 0x11b   : > { %v528_v29 = vadd.f32 %v527_v27, %v526_v26 }
 0x11d   : > { %v529_v31 = vrot.slane %v528_v29, 1 }
 0x11f   : > { %v530_v33 = vadd.f32 %v529_v31, %v528_v29 }
 0x121   : > { %v541_v34 = vadd.f32 %v540_v32, %v530_v33 }
 0x123   : > { %542 = vst [vmem:[%s261_s17] sm:$0x1] %v541_v34 }
 0x124   : > { %726 = shalt.err (!%p723_p5)
}
 0x125   : > { %s727_s13 = scalar_lea.hbm %s957_s26, 16  ;;  %s731_s11 = scalar_lea.hbm %s1005_s5, 48 }
 0x126   : > { %p728_p7 = scmp.ne.s32.totalorder %s957_s26, %s727_s13  ;;  %p732_p11 = scmp.lt.u32.totalorder %s957_s26, %s1005_s5 }
 0x127   : > { %p733_p12 = scmp.lt.u32.totalorder %s731_s11, %s727_s13  ;;  %p735_p0 = scmp.lt.u32.totalorder %s727_s13, %s957_s26 }
 0x128   : > { %p729_p9 = pnand %p728_p7, %p851_p6 }
 0x129   : > { %p734_p13 = por %p733_p12, %p732_p11 }
 0x12a   : > { %p730_p10 = pneg %p729_p9 }
 0x12b   : > { %p736_p1 = por %p735_p0, %p734_p13 }
 0x12d   : > { %p737_p2 = pnand %p736_p1, %p730_p10 }
 0x12f   : > { %740 = shalt.err (!%p737_p2)
}
 0x130   : > { %670 = dma.vmem_to_hbm [thread:$0]  (%p851_p6), %s959_s18, 16, %s957_s26, %s544_s27  }
 0x131 PF: > { %p676_p3 = scmp.ge.s32.totalorder %s775_s23, 2  ;;  %s568_s15 = sand.u32 1, %s763_s20  }
 0x132   : > { %s569_s16 = scalar_lea.sflag [#allocation5], %s568_s15 }
 0x133   : > { %p673_p4 = pnand %p676_p3, %p855_p8 }
 0x135   : > { %758 = dma.done.wait (!%p673_p4), %s569_s16, 16  }
 0x136   : > { %760 = vsyncadd (!%p673_p4), %s569_s16, 4294967280  ;;  %p17_p5 = scmp.ge.s32.totalorder %s836_s25, 5   ;;  %s1008_s20 = smov %s767_s21 }
 0x137   : > { %s1009_s21 = smov %s771_s22  ;;  %s1010_s22 = smov %s849_s28 }
 0x138   : > { %s1011_s23 = smov %s836_s25  ;;  %19 = sbr.rel (!%p17_p5) target bundleno = 6 (0x6), region = 118 }
 0x13f   :  { %573 = vsyncpa [#allocation5], 1 }
 0x140   :  { %575 = vsyncpa [#allocation5 + $0x1], 1 }

</bundles_post_ra>
